<compile_context>
chip_gen: v6e
topology: v6e:2x2x1
jax: 0.10.0
libtpu: 0.0.40
codegen_flags: <defaults>
</compile_context>

<pallas_src>
import math

import jax
import jax.numpy as jnp
from jax.experimental import pallas as pl
from jax.experimental.pallas import tpu as pltpu

_SQRT2 = math.sqrt(2.0)


def _gelu_exact(x):
    # PyTorch nn.GELU() default = exact erf-based GELU (computed in f32).
    return 0.5 * x * (1.0 + jax.lax.erf(x / _SQRT2))


def _layernorm(x, gamma, beta, eps=1e-5):
    # PyTorch nn.LayerNorm: biased variance over the last dim (f32 stats).
    mean = jnp.mean(x, axis=-1, keepdims=True)
    var = jnp.mean((x - mean) ** 2, axis=-1, keepdims=True)
    return (x - mean) * jax.lax.rsqrt(var + eps) * gamma + beta


# ---------------------------------------------------------------------------
# Kernels: one grid step processes a (TILE_B, dim) slab of the batch.
# Weights are bf16 VMEM-resident; accumulation and elementwise math in f32.
# ---------------------------------------------------------------------------
def _mlp_classifier_kernel(x_ref, w1_ref, b1_ref, w2_ref, b2_ref,
                           g_ref, be_ref, w3_ref, b3_ref, o_ref):
    x = x_ref[...]                                                    # (TILE_B, dim) bf16
    # fc1 + GELU   (drop=0.0 -> identity)
    h = jnp.dot(x, w1_ref[...], preferred_element_type=jnp.float32) + b1_ref[...]
    h = _gelu_exact(h)
    # fc2          (drop=0.0 -> identity)
    h = jnp.dot(h.astype(jnp.bfloat16), w2_ref[...],
                preferred_element_type=jnp.float32) + b2_ref[...]
    # LayerNorm(dim)
    h = _layernorm(h, g_ref[...], be_ref[...])
    # final classifier linear (dim -> num_labels_padded)
    out = jnp.dot(h.astype(jnp.bfloat16), w3_ref[...],
                  preferred_element_type=jnp.float32) + b3_ref[...]
    o_ref[...] = out.astype(o_ref.dtype)


def _linear_only_kernel(x_ref, w3_ref, b3_ref, o_ref):
    out = jnp.dot(x_ref[...], w3_ref[...],
                  preferred_element_type=jnp.float32) + b3_ref[...]
    o_ref[...] = out.astype(o_ref.dtype)


# ---------------------------------------------------------------------------
# Wrapper
# ---------------------------------------------------------------------------
def _round_up(n, m):
    return (n + m - 1) // m * m


def _choose_tile_b(b_rows):
    # Fill the 256-wide MXU M dim when the batch allows, but keep >=2 grid
    # steps when possible so the x/out DMA pipeline has work to overlap.
    for t in (256, 128, 64, 32, 16, 8):
        if b_rows >= 2 * t:
            return t
    return 8


def _vmem_limit_bytes(tile_b, dim, labels_p, add_mlp):
    hidden = 2 * dim
    wbytes = 2 * dim * labels_p                            # w3 (bf16), resident
    if add_mlp:
        wbytes += 2 * (dim * hidden + hidden * dim)        # w1 + w2 (bf16), resident
    vec = 4 * 8 * (labels_p + (2 * hidden + 2 * dim if add_mlp else 0))  # f32 rows, 8-sublane padded
    io = 2 * (2 * tile_b * dim) + 2 * (4 * tile_b * labels_p)            # double-buffered x/out tiles
    act = 4 * tile_b * ((hidden + dim + labels_p) if add_mlp else labels_p)
    est = wbytes + vec + io + act
    # 2x headroom, but cap at 48 MiB so the config also fits v7x's 64 MiB VMEM.
    return int(min(max(2 * est, 32 * 2 ** 20), 48 * 2 ** 20))


def linear_classifier_forward(x, params, *, add_mlp):
    """x: (B, ...) -> logits (B, num_labels) in f32. Flatten/pad is wrapper glue."""
    B = x.shape[0]
    xf = x.reshape(B, -1)
    dim = xf.shape[1]
    num_labels = params["w3"].shape[1]

    tile_b = _choose_tile_b(B)
    b_pad = _round_up(B, tile_b)
    labels_p = _round_up(num_labels, 128)                  # lane-dense output stores

    # bf16 matmul operands; bias / LayerNorm params stay f32.
    xb = jnp.pad(xf.astype(jnp.bfloat16), ((0, b_pad - B), (0, 0)))
    w3 = jnp.pad(params["w3"].astype(jnp.bfloat16),
                 ((0, 0), (0, labels_p - num_labels)))
    b3 = jnp.pad(params["b3"].astype(jnp.float32),
                 (0, labels_p - num_labels)).reshape(1, -1)

    grid = (b_pad // tile_b,)
    x_spec = pl.BlockSpec((tile_b, dim), lambda i: (i, 0))
    out_spec = pl.BlockSpec((tile_b, labels_p), lambda i: (i, 0))

    def resident(a):
        # Constant index_map: DMA'd once, stays VMEM-resident across batch tiles.
        return pl.BlockSpec(a.shape, lambda i: (0,) * a.ndim)

    if add_mlp:
        w1 = params["w1"].astype(jnp.bfloat16)
        w2 = params["w2"].astype(jnp.bfloat16)
        b1 = params["b1"].reshape(1, -1).astype(jnp.float32)
        b2 = params["b2"].reshape(1, -1).astype(jnp.float32)
        g = params["ln_gamma"].reshape(1, -1).astype(jnp.float32)
        be = params["ln_beta"].reshape(1, -1).astype(jnp.float32)
        args = (xb, w1, b1, w2, b2, g, be, w3, b3)
        kernel = _mlp_classifier_kernel
    else:
        args = (xb, w3, b3)
        kernel = _linear_only_kernel

    in_specs = [x_spec] + [resident(a) for a in args[1:]]

    out = pl.pallas_call(
        kernel,
        out_shape=jax.ShapeDtypeStruct((b_pad, labels_p), jnp.float32),
        grid=grid,
        in_specs=in_specs,
        out_specs=out_spec,
        compiler_params=pltpu.CompilerParams(
            dimension_semantics=("parallel",),     # shard batch tiles across TCs (v7x megacore)
            vmem_limit_bytes=_vmem_limit_bytes(tile_b, dim, labels_p, add_mlp),
        ),
    )(*args)
    return out[:B, :num_labels]


# ---------------------------------------------------------------------------
# Parameter init (matches nn.Module __init__); weights stored (in, out), f32.
# ---------------------------------------------------------------------------
def init_params(key, dim, num_labels, add_mlp):
    ks = jax.random.split(key, 6)
    params = {}
    if add_mlp:
        lim1 = 1.0 / math.sqrt(dim)
        lim2 = 1.0 / math.sqrt(2 * dim)
        params["w1"] = jax.random.uniform(ks[0], (dim, 2 * dim), jnp.float32, -lim1, lim1)
        params["b1"] = jax.random.uniform(ks[1], (2 * dim,), jnp.float32, -lim1, lim1)
        params["w2"] = jax.random.uniform(ks[2], (2 * dim, dim), jnp.float32, -lim2, lim2)
        params["b2"] = jax.random.uniform(ks[3], (dim,), jnp.float32, -lim2, lim2)
        params["ln_gamma"] = jnp.ones((dim,), jnp.float32)
        params["ln_beta"] = jnp.zeros((dim,), jnp.float32)
    # self.linear: weight ~ N(0, 0.01), bias = 0
    params["w3"] = 0.01 * jax.random.normal(ks[4], (dim, num_labels), jnp.float32)
    params["b3"] = jnp.zeros((num_labels,), jnp.float32)
    return params


# ---------------------------------------------------------------------------
# References
# ---------------------------------------------------------------------------
def _reference_forward_bf16(x, params, *, add_mlp):
    """Same arithmetic as the kernel (bf16 matmul operands, f32 accumulation)."""
    B = x.shape[0]
    h = x.reshape(B, -1).astype(jnp.bfloat16)
    if add_mlp:
        h = jnp.dot(h, params["w1"].astype(jnp.bfloat16),
                    preferred_element_type=jnp.float32) + params["b1"]
        h = _gelu_exact(h)
        h = jnp.dot(h.astype(jnp.bfloat16), params["w2"].astype(jnp.bfloat16),
                    preferred_element_type=jnp.float32) + params["b2"]
        h = _layernorm(h, params["ln_gamma"], params["ln_beta"])
        h = h.astype(jnp.bfloat16)
    return jnp.dot(h, params["w3"].astype(jnp.bfloat16),
                   preferred_element_type=jnp.float32) + params["b3"]


def _reference_forward_f32(x, params, *, add_mlp):
    """Full-precision PyTorch-equivalent reference."""
    B = x.shape[0]
    h = x.reshape(B, -1).astype(jnp.float32)
    if add_mlp:
        h = _gelu_exact(h @ params["w1"] + params["b1"])
        h = h @ params["w2"] + params["b2"]
        h = _layernorm(h, params["ln_gamma"], params["ln_beta"])
    return h @ params["w3"] + params["b3"]


if __name__ == "__main__":
    # TODO(synk): nn.Dropout with drop > 0.0 in training mode is not modeled
    # (module default drop=0.0 -> identity, which is what we implement).
    key = jax.random.PRNGKey(0)
    B, C, H, W = 16, 4, 8, 8            # flattened feature dim = 256
    dim = C * H * W
    num_labels = 100                    # deliberately not 128-aligned (wrapper pads to 128)

    kx, kp1, kp2 = jax.random.split(key, 3)
    x = jax.random.normal(kx, (B, C, H, W), jnp.float32)

    ok = True
    for add_mlp, kp in ((True, kp1), (False, kp2)):
        params = init_params(kp, dim, num_labels, add_mlp)
        out = jax.block_until_ready(
            linear_classifier_forward(x, params, add_mlp=add_mlp))
        ref_bf16 = _reference_forward_bf16(x, params, add_mlp=add_mlp)
        ref_f32 = _reference_forward_f32(x, params, add_mlp=add_mlp)
        if out.shape != (B, num_labels):
            ok = False
        # Tight check vs a reference with identical bf16 operand rounding.
        if not jnp.allclose(out, ref_bf16, atol=5e-3, rtol=5e-3):
            ok = False
        # Loose sanity check vs the full-f32 PyTorch-equivalent math.
        if not jnp.allclose(out, ref_f32, atol=5e-2, rtol=5e-2):
            ok = False

    if ok:
        print("KERNEL_OK")
</pallas_src>

<mosaic_0001>
module attributes {stable_mosaic.version = 11 : i64} {
  func.func @_mlp_classifier_kernel(%arg0: i32, %arg1: memref<8x256xbf16, #tpu.memory_space<vmem>>, %arg2: memref<256x512xbf16, #tpu.memory_space<vmem>>, %arg3: memref<1x512xf32, #tpu.memory_space<vmem>>, %arg4: memref<512x256xbf16, #tpu.memory_space<vmem>>, %arg5: memref<1x256xf32, #tpu.memory_space<vmem>>, %arg6: memref<1x256xf32, #tpu.memory_space<vmem>>, %arg7: memref<1x256xf32, #tpu.memory_space<vmem>>, %arg8: memref<256x128xbf16, #tpu.memory_space<vmem>>, %arg9: memref<1x128xf32, #tpu.memory_space<vmem>>, %arg10: memref<8x128xf32, #tpu.memory_space<vmem>>) attributes {dimension_semantics = [#tpu.dimension_semantics<parallel>], iteration_bounds = array<i64: 2>, scalar_prefetch = 0 : i64, scratch_operands = 0 : i64, tpu.core_type = #tpu.core_type<tc>, window_params = [{transform_indices = @transform_0, window_bounds = array<i64: 8, 256>}, {pipeline_mode = #tpu.pipeline_mode<synchronous>, transform_indices = @transform_1, window_bounds = array<i64: 256, 512>}, {pipeline_mode = #tpu.pipeline_mode<synchronous>, transform_indices = @transform_2, window_bounds = array<i64: 1, 512>}, {pipeline_mode = #tpu.pipeline_mode<synchronous>, transform_indices = @transform_3, window_bounds = array<i64: 512, 256>}, {pipeline_mode = #tpu.pipeline_mode<synchronous>, transform_indices = @transform_4, window_bounds = array<i64: 1, 256>}, {pipeline_mode = #tpu.pipeline_mode<synchronous>, transform_indices = @transform_5, window_bounds = array<i64: 1, 256>}, {pipeline_mode = #tpu.pipeline_mode<synchronous>, transform_indices = @transform_6, window_bounds = array<i64: 1, 256>}, {pipeline_mode = #tpu.pipeline_mode<synchronous>, transform_indices = @transform_7, window_bounds = array<i64: 256, 128>}, {pipeline_mode = #tpu.pipeline_mode<synchronous>, transform_indices = @transform_8, window_bounds = array<i64: 1, 128>}, {transform_indices = @transform_9, window_bounds = array<i64: 8, 128>}]} {
    %c0 = arith.constant 0 : index
    %c0_0 = arith.constant 0 : index
    %0 = vector.load %arg1[%c0, %c0_0] : memref<8x256xbf16, #tpu.memory_space<vmem>>, vector<8x256xbf16>
    %c0_1 = arith.constant 0 : index
    %c0_2 = arith.constant 0 : index
    %1 = vector.load %arg2[%c0_1, %c0_2] : memref<256x512xbf16, #tpu.memory_space<vmem>>, vector<256x512xbf16>
    %cst = arith.constant dense<0.000000e+00> : vector<8x512xf32>
    %2 = tpu.matmul %0, %1, %cst {dimension_numbers = #tpu.dot_dimension_numbers<[1], [0], [0], [1], [0, 0, 1, 1], [], []>} : vector<8x256xbf16>, vector<256x512xbf16>, vector<8x512xf32> -> vector<8x512xf32>
    %c0_3 = arith.constant 0 : index
    %c0_4 = arith.constant 0 : index
    %3 = vector.load %arg3[%c0_3, %c0_4] : memref<1x512xf32, #tpu.memory_space<vmem>>, vector<1x512xf32>
    %4 = vector.broadcast %3 : vector<1x512xf32> to vector<8x512xf32>
    %5 = arith.addf %2, %4 : vector<8x512xf32>
    %cst_5 = arith.constant 5.000000e-01 : f32
    %6 = vector.broadcast %cst_5 : f32 to vector<8x512xf32>
    %7 = arith.mulf %6, %5 : vector<8x512xf32>
    %cst_6 = arith.constant 1.41421354 : f32
    %8 = vector.broadcast %cst_6 : f32 to vector<8x512xf32>
    %9 = arith.divf %5, %8 : vector<8x512xf32>
    %10 = math.erf %9 : vector<8x512xf32>
    %cst_7 = arith.constant 1.000000e+00 : f32
    %11 = vector.broadcast %cst_7 : f32 to vector<8x512xf32>
    %12 = arith.addf %11, %10 : vector<8x512xf32>
    %13 = arith.mulf %7, %12 : vector<8x512xf32>
    %14 = arith.truncf %13 : vector<8x512xf32> to vector<8x512xbf16>
    %c0_8 = arith.constant 0 : index
    %c0_9 = arith.constant 0 : index
    %15 = vector.load %arg4[%c0_8, %c0_9] : memref<512x256xbf16, #tpu.memory_space<vmem>>, vector<512x256xbf16>
    %cst_10 = arith.constant dense<0.000000e+00> : vector<8x256xf32>
    %16 = tpu.matmul %14, %15, %cst_10 {dimension_numbers = #tpu.dot_dimension_numbers<[1], [0], [0], [1], [0, 0, 1, 1], [], []>} : vector<8x512xbf16>, vector<512x256xbf16>, vector<8x256xf32> -> vector<8x256xf32>
    %c0_11 = arith.constant 0 : index
    %c0_12 = arith.constant 0 : index
    %17 = vector.load %arg5[%c0_11, %c0_12] : memref<1x256xf32, #tpu.memory_space<vmem>>, vector<1x256xf32>
    %18 = vector.broadcast %17 : vector<1x256xf32> to vector<8x256xf32>
    %19 = arith.addf %16, %18 : vector<8x256xf32>
    %c0_13 = arith.constant 0 : index
    %c0_14 = arith.constant 0 : index
    %20 = vector.load %arg6[%c0_13, %c0_14] : memref<1x256xf32, #tpu.memory_space<vmem>>, vector<1x256xf32>
    %c0_15 = arith.constant 0 : index
    %c0_16 = arith.constant 0 : index
    %21 = vector.load %arg7[%c0_15, %c0_16] : memref<1x256xf32, #tpu.memory_space<vmem>>, vector<1x256xf32>
    %cst_17 = arith.constant dense<0.000000e+00> : vector<8xf32>
    %22 = vector.multi_reduction <add>, %19, %cst_17 [1] : vector<8x256xf32> to vector<8xf32>
    %23 = vector.shape_cast %22 : vector<8xf32> to vector<8x1xf32>
    %cst_18 = arith.constant 2.560000e+02 : f32
    %24 = vector.broadcast %cst_18 : f32 to vector<8x1xf32>
    %25 = arith.divf %23, %24 : vector<8x1xf32>
    %26 = vector.broadcast %25 : vector<8x1xf32> to vector<8x256xf32>
    %27 = arith.subf %19, %26 : vector<8x256xf32>
    %28 = arith.mulf %27, %27 : vector<8x256xf32>
    %cst_19 = arith.constant dense<0.000000e+00> : vector<8xf32>
    %29 = vector.multi_reduction <add>, %28, %cst_19 [1] : vector<8x256xf32> to vector<8xf32>
    %30 = vector.shape_cast %29 : vector<8xf32> to vector<8x1xf32>
    %cst_20 = arith.constant 2.560000e+02 : f32
    %31 = vector.broadcast %cst_20 : f32 to vector<8x1xf32>
    %32 = arith.divf %30, %31 : vector<8x1xf32>
    %33 = vector.broadcast %25 : vector<8x1xf32> to vector<8x256xf32>
    %34 = arith.subf %19, %33 : vector<8x256xf32>
    %cst_21 = arith.constant 9.99999974E-6 : f32
    %35 = vector.broadcast %cst_21 : f32 to vector<8x1xf32>
    %36 = arith.addf %32, %35 : vector<8x1xf32>
    %37 = math.rsqrt %36 : vector<8x1xf32>
    %38 = vector.broadcast %37 : vector<8x1xf32> to vector<8x256xf32>
    %39 = arith.mulf %34, %38 : vector<8x256xf32>
    %40 = vector.broadcast %20 : vector<1x256xf32> to vector<8x256xf32>
    %41 = arith.mulf %39, %40 : vector<8x256xf32>
    %42 = vector.broadcast %21 : vector<1x256xf32> to vector<8x256xf32>
    %43 = arith.addf %41, %42 : vector<8x256xf32>
    %44 = arith.truncf %43 : vector<8x256xf32> to vector<8x256xbf16>
    %c0_22 = arith.constant 0 : index
    %c0_23 = arith.constant 0 : index
    %45 = vector.load %arg8[%c0_22, %c0_23] : memref<256x128xbf16, #tpu.memory_space<vmem>>, vector<256x128xbf16>
    %cst_24 = arith.constant dense<0.000000e+00> : vector<8x128xf32>
    %46 = tpu.matmul %44, %45, %cst_24 {dimension_numbers = #tpu.dot_dimension_numbers<[1], [0], [0], [1], [0, 0, 1, 1], [], []>} : vector<8x256xbf16>, vector<256x128xbf16>, vector<8x128xf32> -> vector<8x128xf32>
    %c0_25 = arith.constant 0 : index
    %c0_26 = arith.constant 0 : index
    %47 = vector.load %arg9[%c0_25, %c0_26] : memref<1x128xf32, #tpu.memory_space<vmem>>, vector<1x128xf32>
    %48 = vector.broadcast %47 : vector<1x128xf32> to vector<8x128xf32>
    %49 = arith.addf %46, %48 : vector<8x128xf32>
    %c0_27 = arith.constant 0 : index
    %c0_28 = arith.constant 0 : index
    %50 = vector.load %arg10[%c0_27, %c0_28] : memref<8x128xf32, #tpu.memory_space<vmem>>, vector<8x128xf32>
    tpu.vector_store %arg10[%c0_27, %c0_28], %49 {strides = array<i32>} : memref<8x128xf32, #tpu.memory_space<vmem>>, vector<8x128xf32>,
    return
  }
  func.func @transform_0(%arg0: i32) -> (i32, i32) {
    %c0_i32 = arith.constant 0 : i32
    %c0_i32_0 = arith.constant 0 : i32
    return %arg0, %c0_i32 : i32, i32
  }
  func.func @transform_1(%arg0: i32) -> (i32, i32) {
    %c0_i32 = arith.constant 0 : i32
    %c0_i32_0 = arith.constant 0 : i32
    %c0_i32_1 = arith.constant 0 : i32
    return %c0_i32, %c0_i32_0 : i32, i32
  }
  func.func @transform_2(%arg0: i32) -> (i32, i32) {
    %c0_i32 = arith.constant 0 : i32
    %c0_i32_0 = arith.constant 0 : i32
    %c0_i32_1 = arith.constant 0 : i32
    return %c0_i32, %c0_i32_0 : i32, i32
  }
  func.func @transform_3(%arg0: i32) -> (i32, i32) {
    %c0_i32 = arith.constant 0 : i32
    %c0_i32_0 = arith.constant 0 : i32
    %c0_i32_1 = arith.constant 0 : i32
    return %c0_i32, %c0_i32_0 : i32, i32
  }
  func.func @transform_4(%arg0: i32) -> (i32, i32) {
    %c0_i32 = arith.constant 0 : i32
    %c0_i32_0 = arith.constant 0 : i32
    %c0_i32_1 = arith.constant 0 : i32
    return %c0_i32, %c0_i32_0 : i32, i32
  }
  func.func @transform_5(%arg0: i32) -> (i32, i32) {
    %c0_i32 = arith.constant 0 : i32
    %c0_i32_0 = arith.constant 0 : i32
    %c0_i32_1 = arith.constant 0 : i32
    return %c0_i32, %c0_i32_0 : i32, i32
  }
  func.func @transform_6(%arg0: i32) -> (i32, i32) {
    %c0_i32 = arith.constant 0 : i32
    %c0_i32_0 = arith.constant 0 : i32
    %c0_i32_1 = arith.constant 0 : i32
    return %c0_i32, %c0_i32_0 : i32, i32
  }
  func.func @transform_7(%arg0: i32) -> (i32, i32) {
    %c0_i32 = arith.constant 0 : i32
    %c0_i32_0 = arith.constant 0 : i32
    %c0_i32_1 = arith.constant 0 : i32
    return %c0_i32, %c0_i32_0 : i32, i32
  }
  func.func @transform_8(%arg0: i32) -> (i32, i32) {
    %c0_i32 = arith.constant 0 : i32
    %c0_i32_0 = arith.constant 0 : i32
    %c0_i32_1 = arith.constant 0 : i32
    return %c0_i32, %c0_i32_0 : i32, i32
  }
  func.func @transform_9(%arg0: i32) -> (i32, i32) {
    %c0_i32 = arith.constant 0 : i32
    %c0_i32_0 = arith.constant 0 : i32
    return %arg0, %c0_i32 : i32, i32
  }
}

</mosaic_0001>

<bundles_post_ra>
// kernel: tpu_custom_call.1
= control target key start
LH: loop header
LB: loop body
LE: loop exit
PB: predicated region body
PF: predicated region fallthrough
CT: control target
= control target key end

     0   :  { %s2758_s0 = inlined_call_operand.hbm [shape: bf16[16,256], index: 0, kind: input, shape index: {}]   ;;  %s2759_s1 = inlined_call_operand.hbm [shape: bf16[256,512], index: 1, kind: input, shape index: {}]   ;;  %s2760_s2 = inlined_call_operand.hbm [shape: f32[1,512], index: 2, kind: input, shape index: {}]   ;;  %s2761_s3 = inlined_call_operand.hbm [shape: bf16[512,256], index: 3, kind: input, shape index: {}]   ;;  %s2762_s4 = inlined_call_operand.vmem [shape: f32[1,256], index: 4, kind: input, shape index: {}]   ;;  %s2763_s5 = inlined_call_operand.vmem [shape: f32[1,256], index: 5, kind: input, shape index: {}]   ;;  %s2764_s6 = inlined_call_operand.vmem [shape: f32[1,256], index: 6, kind: input, shape index: {}]   ;;  %s2765_s7 = inlined_call_operand.hbm [shape: bf16[256,128], index: 7, kind: input, shape index: {}]   ;;  %s2766_s8 = inlined_call_operand.vmem [shape: f32[1,128], index: 8, kind: input, shape index: {}]   ;;  %s2767_s9 = inlined_call_operand.hbm [shape: f32[16,128], index: 9, kind: output, shape index: {}]  }
   0x1   :  { %2772 = sst [smem:[#allocation16_spill]] %s2759_s1 }
   0x2   :  { %2773 = sst [smem:[#allocation17_spill]] %s2760_s2 }
   0x3   :  { %2774 = sst [smem:[#allocation18_spill]] %s2761_s3 }
   0x4   :  { %2775 = sst [smem:[#allocation19_spill]] %s2765_s7 }
   0x5   :  { %14 = vsyncpa [#allocation3], 0 }
   0x6   :  { %16 = vsyncpa [#allocation3 + $0x1], 0 }
   0x7   :  { %17 = vsyncpa [#allocation6], 0 }
   0x8   :  { %18 = vsyncpa [#allocation9], 0 }
   0x9   :  { %19 = vsyncpa [#allocation4], 0 }
   0xa   :  { %21 = vsyncpa [#allocation4 + $0x1], 0  ;;  %s2522_s30 = smov 0   ;;  %s2524_s10 = smov 0  }
   0xb   :  { %s2526_s11 = smov 0   ;;  %s2528_s12 = smov 0  }
   0xc LB: > { %s2460_s13 = smov [#allocation5]   ;;  %s2543_s15 = sadd.s32 4294967295, %s2458_s12   ;;  %s2458_s12 = sphi %s2528_s12, %s2799_s12   ;;  %s2454_s11 = sphi %s2526_s11, %s2798_s11   ;;  %s2450_s10 = sphi %s2524_s10, %s2797_s10   ;;  %s2446_s30 = sphi %s2522_s30, %s2796_s30  }
   0xd   : > { %s264_s14 = sshll.u32 %s2460_s13, 4  ;;  %p1751_p0 = scmp.ge.s32.totalorder %s2458_s12, 1  ;;  %s265_s14 = int_to_ptr.vmem [resolvable:$true] %s264_s14 }
   0xe   : > { %p2768_p1 = scmp.eq.s32.totalorder %s2543_s15, 0  ;;  %p252_p2 = scmp.lt.s32.totalorder %s2458_s12, 3 }
   0xf   : > { %s2461_s17 = smov [#allocation8]   ;;  %s2462_s20 = smov [#allocation7]  }
  0x10   : > { %p2548_p3 = pnand %p1751_p0, %p252_p2  ;;  %s288_s18 = sshll.u32 %s2461_s17, 4  ;;  %s2561_s18 = int_to_ptr.vmem [resolvable:$true] %s288_s18 }
  0x11   : > { %s2563_s21 = sshll.u32 %s2462_s20, 4  ;;  %s2265_s22 = scalar_lea.vmem %s265_s14, 8192  ;;  %s279_s21 = int_to_ptr.vmem [resolvable:$true] %s2563_s21 }
  0x12   : > { %s2776_s16 = scalar_select %p2548_p3, 1, 0 }
  0x13   : > { %p1961_p5 = pneg %p2548_p3  ;;  %p2266_p8 = scmp.ne.s32.totalorder %s265_s14, %s2265_s22 }
  0x14   : > { %p2273_p11 = scmp.lt.s32.totalorder %s265_s14, %s265_s14  ;;  %p2274_p12 = scmp.lt.s32.totalorder %s2265_s22, %s2265_s22 }
  0x15   : > { %p2557_p6 = pnand %p1961_p5, %p2768_p1 }
  0x16   : > { %p2275_p13 = por %p2274_p12, %p2273_p11 }
  0x17   : > { %p2256_p7 = pneg %p2557_p6 }
  0x19   : > { %p2268_p9 = pnand %p2266_p8, %p2256_p7 }
  0x1b   : > { %p2269_p10 = pneg %p2268_p9 }
  0x1d   : > { %p2276_p0 = pnand %p2275_p13, %p2269_p10 }
  0x1f   : > { %2279 = shalt.err (!%p2276_p0)
}
  0x20   : > { %s2463_s23 = smov 256   ;;  %s2464_s24 = smov 16  }
  0x21   : > { %s2778_s1 = sld [smem:[#allocation16_spill]]  ;;  %s2291_s27 = scalar_lea.vmem %s2561_s18, 8192 }
  0x22   : > { %p2292_p2 = scmp.ne.s32.totalorder %s2561_s18, %s2291_s27  ;;  %p2299_p9 = scmp.lt.s32.totalorder %s2561_s18, %s2561_s18 }
  0x23   : > { %p2300_p10 = scmp.lt.s32.totalorder %s2291_s27, %s2291_s27 }
  0x24   : > { %p2294_p5 = pnand %p2292_p2, %p2256_p7 }
  0x25   : > { %p2301_p11 = por %p2300_p10, %p2299_p9 }
  0x26   : > { %p2295_p8 = pneg %p2294_p5 }
  0x27   : > { %1964 = dma.hbm_to_vmem [thread:$0]  (!%p2557_p6), %s2778_s1, 8192, %s265_s14, [#allocation6], %s2463_s23, %s2463_s23, %s2464_s24  }
  0x28   : > { %p2302_p12 = pnand %p2301_p11, %p2295_p8 }
  0x2a   : > { %2305 = shalt.err (!%p2302_p12)
}
  0x2b   : > { %s2465_s28 = smov 128   ;;  %s2466_s29 = smov 8  }
  0x2c   : > { %s2779_s3 = sld [smem:[#allocation18_spill]]  ;;  %s2317_s17 = scalar_lea.vmem %s279_s21, 64 }
  0x2d   : > { %p2318_p13 = scmp.ne.s32.totalorder %s279_s21, %s2317_s17  ;;  %p2325_p5 = scmp.lt.s32.totalorder %s279_s21, %s279_s21 }
  0x2e   : > { %p2326_p8 = scmp.lt.s32.totalorder %s2317_s17, %s2317_s17 }
  0x2f   : > { %p2320_p0 = pnand %p2318_p13, %p2256_p7 }
  0x30   : > { %p2327_p9 = por %p2326_p8, %p2325_p5 }
  0x31   : > { %p2321_p2 = pneg %p2320_p0 }
  0x32   : > { %1970 = dma.hbm_to_vmem [thread:$0]  (!%p2557_p6), %s2779_s3, 8192, %s2561_s18, [#allocation9], %s2465_s28, %s2465_s28, %s2466_s29  }
  0x33   : > { %p2328_p10 = pnand %p2327_p9, %p2321_p2 }
  0x35   : > { %2331 = shalt.err (!%p2328_p10)
}
  0x36   : > { %s2780_s2 = sld [smem:[#allocation17_spill]]  ;;  %s2467_s18 = smov [#allocation10]  }
  0x37   : > { %s310_s23 = sshll.u32 %s2467_s18, 4  ;;  %s311_s23 = int_to_ptr.vmem [resolvable:$true] %s310_s23 }
  0x38   : > { %s2343_s24 = scalar_lea.vmem %s311_s23, 2048  ;;  %p2351_p0 = scmp.lt.s32.totalorder %s311_s23, %s311_s23 }
  0x39   : > { %p2344_p11 = scmp.ne.s32.totalorder %s311_s23, %s2343_s24  ;;  %p2352_p5 = scmp.lt.s32.totalorder %s2343_s24, %s2343_s24 }
  0x3b   : > { %p2346_p12 = pnand %p2344_p11, %p2256_p7  ;;  %p2353_p2 = por %p2352_p5, %p2351_p0 }
  0x3c   : > { %1967 = dma.hbm_to_vmem [thread:$0]  (!%p2557_p6), %s2780_s2, 64, %s279_s21, [#allocation6]  }
  0x3d   : > { %p2347_p13 = pneg %p2346_p12 }
  0x3f   : > { %p2354_p8 = pnand %p2353_p2, %p2347_p13 }
  0x41   : > { %2357 = shalt.err (!%p2354_p8)
}
  0x42   : > { %s2468_s25 = smov 64   ;;  %s2469_s21 = smov 4  }
  0x43   : > { %s2781_s7 = sld [smem:[#allocation19_spill]]  ;;  %s1750_s28 = sadd.s32 4294967294, %s2458_s12  }
  0x44   : > { %s2607_s29 = sadd.s32 1, %s2458_s12   ;;  %s34_s14 = sadd.s32 1, %s2454_s11 }
  0x45   : > { %s31_s13 = ssub.s32 %s2458_s12, %s2607_s29  ;;  %p41_p9 = scmp.ne.s32.totalorder %s2454_s11, %s2450_s10 }
  0x46   : > { %p32_p7 = scmp.eq.s32.totalorder %s31_s13, 0  ;;  %p42_p10 = scmp.eq.s32.totalorder %s2458_s12, 0 }
  0x47   : > { %p47_p11 = scmp.ne.s32.totalorder %s2450_s10, %s2446_s30  ;;  %p239_p13 = scmp.eq.s32.totalorder %s2543_s15, 1 }
  0x48   : > { %s2618_s17 = scalar_select %p32_p7, %s2454_s11, %s34_s14  }
  0x49   : > { %1973 = dma.hbm_to_vmem [thread:$0]  (!%p2557_p6), %s2781_s7, 2048, %s311_s23, [#allocation9], %s2468_s25, %s2468_s25, %s2469_s21  }
  0x4a   : > { %p2620_p12 = por %p42_p10, %p41_p9  ;;  %p2626_p6 = por %p2768_p1, %p47_p11 }
  0x4b   : > { %p245_p0 = scmp.eq.s32.totalorder %s1750_s28, 1  ;;  %p1986_p5 = scmp.lt.s32.totalorder %s2458_s12, 2 }
  0x4c   : > { %s2783_s20 = scalar_select %p2626_p6, 1, 0 }
  0x4d   : > { %s327_s22 = sand.u32 1, %s2454_s11   ;;  %p2633_p2 = por %p239_p13, %p41_p9 }
  0x4e   : > { %p2637_p8 = por %p245_p0, %p47_p11  ;;  %s1757_s24 = sshll.u32 %s327_s22, 3 }
  0x4f   : > { %s2784_s18 = scalar_select %p2633_p2, 1, 0 }
  0x50   : > { %s2785_s23 = scalar_select %p2637_p8, 1, 0 }
  0x51   : > { %s1918_s25 = sshll.u32 %s2458_s12, 7  ;;  %s331_s28 = scalar_lea.vmem [#allocation2], %s1757_s24 }
  0x52   : > { %s2645_s27 = scalar_lea.hbm %s2758_s0, %s1918_s25  ;;  %s339_s13 = sshll.u32 %s331_s28, 4  ;;  %s340_s13 = int_to_ptr.vmem [resolvable:$true] %s339_s13 }
  0x53   : > { %p2649_p7 = pnand %p1986_p5, %p2620_p12  ;;  %s328_s1 = scalar_lea.sflag [#allocation3], %s327_s22 }
  0x54   : > { %s2358_s2 = scalar_lea.hbm %s2645_s27, 128  ;;  %s2363_s26 = scalar_lea.hbm %s2758_s0, 256 }
  0x55   : > { %p2359_p9 = scmp.ne.s32.totalorder %s2645_s27, %s2358_s2  ;;  %p2360_p10 = pneg %p2649_p7 }
  0x56   : > { %p2364_p0 = scmp.lt.s32.totalorder %s2645_s27, %s2758_s0  ;;  %p2365_p12 = scmp.lt.s32.totalorder %s2363_s26, %s2358_s2 }
  0x57   : > { %p2361_p11 = pnand %p2360_p10, %p2359_p9 }
  0x58   : > { %p2366_p5 = por %p2365_p12, %p2364_p0 }
  0x59   : > { %p2362_p13 = pneg %p2361_p11 }
  0x5b   : > { %p2367_p4 = pnand %p2366_p5, %p2362_p13 }
  0x5d   : > { %2370 = shalt.err (!%p2367_p4)
}
  0x5e   : > { %s2371_s19 = scalar_lea.vmem %s340_s13, 128  ;;  %s2470_s22 = smov [#allocation2]  }
  0x5f   : > { %p2372_p1 = scmp.ne.s32.totalorder %s340_s13, %s2371_s19  ;;  %s2376_s3 = sshll.u32 %s2470_s22, 4  ;;  %s2377_s3 = int_to_ptr.vmem [resolvable:$false] %s2376_s3 }
  0x60   : > { %s2378_s7 = scalar_lea.vmem %s2377_s3, 256  ;;  %p2379_p9 = scmp.lt.s32.totalorder %s340_s13, %s2377_s3 }
  0x61   : > { %p2374_p8 = pnand %p2372_p1, %p2360_p10  ;;  %p2380_p11 = scmp.lt.s32.totalorder %s2378_s7, %s2371_s19 }
  0x63   : > { %p2375_p2 = pneg %p2374_p8  ;;  %p2381_p6 = por %p2380_p11, %p2379_p9 }
  0x65   : > { %p2382_p3 = pnand %p2381_p6, %p2375_p2 }
  0x67   : > { %2385 = shalt.err (!%p2382_p3)
}
  0x68   : > { %1977 = dma.hbm_to_vmem [thread:$0]  (!%p2649_p7), %s2645_s27, 128, %s340_s13, %s328_s1  }
  0x69   : > { %p2787_p13 = scmp.ne.s32.totalorder %s2776_s16, 0 }
  0x6a   : > { %s2670_s2 = sand.u32 (!%p2787_p13), 1, %s2450_s10   ;;  %p2788_p1 = scmp.ne.s32.totalorder (!%p2787_p13), %s2783_s20, 0 }
  0x6b   : > { %348 = sbr.rel (%p2787_p13) target bundleno = 1128 (0x468), region = 56  ;;  %s1761_s25 = sshll.u32 (!%p2787_p13), %s2670_s2, 3 }
  0x6c   : > { %s351_s3 = scalar_lea.sflag (!%p2787_p13), [#allocation3], %s2670_s2  ;;  %s2676_s7 = scalar_lea.vmem (!%p2787_p13), [#allocation2], %s1761_s25 }
  0x70   : > { %2429 = dma.done.wait (%p2788_p1), %s351_s3, 128  }
  0x71   : > { %2431 = vsyncadd (%p2788_p1), %s351_s3, 4294967168  ;;  %p2789_p3 = scmp.eq.s32.totalorder %s2543_s15, 0 }
  0x73   : > { %2433 = dma.done.wait (%p2789_p3), [#allocation6], 8256   ;;  %p2790_p4 = pmov %p2789_p3 }
  0x74   : > { %p2791_p6 = pmov %p2789_p3 }
  0x75   : > { %2435 = vsyncadd (%p2790_p4), [#allocation6], 4294959040 }
  0x76   : > { %2437 = dma.done.wait (%p2791_p6), [#allocation9], 10240   ;;  %p2792_p2 = pmov %p2789_p3 }
  0x77   : > { %v2034_v0 = vld [vmem:[#allocation5 + $0xe4] ss:$16 sps:$4 sm:$0xff]   ;;  %v2036_v1 = vld [vmem:[#allocation5 + $0xec] ss:$16 sps:$4 sm:$0xff]   ;;  %v2038_v2 = vld [vmem:[#allocation5 + $0xe0] ss:$16 sps:$4 sm:$0xff]  }
  0x78   : > { %2439 = vsyncadd (%p2792_p2), [#allocation9], 4294957056  ;;  %820 = vmatprep.subr.bf16.mxu0 %v2034_v0  ;;  %v2039_v3 = vld [vmem:[#allocation5 + $0xe8] ss:$16 sps:$4 sm:$0xff]   ;;  %861 = vmatprep.subr.bf16.mxu1 %v2036_v1  ;;  %v2040_v4 = vld [vmem:[#allocation5 + $0xc4] ss:$16 sps:$4 sm:$0xff]  }
  0x79   : > { %821 = vmatpush1.bf16.msra.mxu0 %v2038_v2  ;;  %862 = vmatpush1.bf16.msra.mxu1 %v2039_v3  ;;  %v2042_v5 = vld [vmem:[#allocation5 + $0xcc] ss:$16 sps:$4 sm:$0xff]   ;;  %v2044_v6 = vld [vmem:[#allocation5 + $0xc0] ss:$16 sps:$4 sm:$0xff]   ;;  %v2045_v7 = vld [vmem:[#allocation5 + $0xc8] ss:$16 sps:$4 sm:$0xff]  }
  0x7a   : > { %822 = vmatprep.subr.bf16.mxu0 %v2040_v4  ;;  %863 = vmatprep.subr.bf16.mxu1 %v2042_v5  ;;  %v2046_v8 = vld [vmem:[#allocation5 + $0xa4] ss:$16 sps:$4 sm:$0xff]   ;;  %v2048_v9 = vld [vmem:[#allocation5 + $0xac] ss:$16 sps:$4 sm:$0xff]   ;;  %v2050_v10 = vld [vmem:[#allocation5 + $0xa0] ss:$16 sps:$4 sm:$0xff]  }
  0x7b   : > { %v2051_v11 = vld [vmem:[#allocation5 + $0xa8] ss:$16 sps:$4 sm:$0xff]   ;;  %v2052_v12 = vld [vmem:[#allocation5 + $0x84] ss:$16 sps:$4 sm:$0xff]   ;;  %v2054_v13 = vld [vmem:[#allocation5 + $0x8c] ss:$16 sps:$4 sm:$0xff]  }
  0x7c   : > { %v2056_v14 = vld [vmem:[#allocation5 + $0x80] ss:$16 sps:$4 sm:$0xff]   ;;  %v2057_v15 = vld [vmem:[#allocation5 + $0x88] ss:$16 sps:$4 sm:$0xff]   ;;  %v2058_v16 = vld [vmem:[#allocation5 + $0x64] ss:$16 sps:$4 sm:$0xff]  }
  0x7d   : > { %823 = vmatpush1.bf16.msra.mxu0 %v2044_v6  ;;  %864 = vmatpush1.bf16.msra.mxu1 %v2045_v7  ;;  %v2060_v17 = vld [vmem:[#allocation5 + $0x6c] ss:$16 sps:$4 sm:$0xff]   ;;  %v2062_v18 = vld [vmem:[#allocation5 + $0x60] ss:$16 sps:$4 sm:$0xff]   ;;  %v2063_v19 = vld [vmem:[#allocation5 + $0x68] ss:$16 sps:$4 sm:$0xff]  }
  0x7e   : > { %824 = vmatprep.subr.bf16.mxu0 %v2046_v8  ;;  %865 = vmatprep.subr.bf16.mxu1 %v2048_v9  ;;  %v2064_v20 = vld [vmem:[#allocation5 + $0x44] ss:$16 sps:$4 sm:$0xff]   ;;  %v2066_v21 = vld [vmem:[#allocation5 + $0x4c] ss:$16 sps:$4 sm:$0xff]   ;;  %v2068_v22 = vld [vmem:[#allocation5 + $0x40] ss:$16 sps:$4 sm:$0xff]  }
  0x7f   : > { %v2069_v23 = vld [vmem:[#allocation5 + $0x48] ss:$16 sps:$4 sm:$0xff]   ;;  %v2070_v24 = vld [vmem:[#allocation5 + $0x24] ss:$16 sps:$4 sm:$0xff]   ;;  %v2072_v25 = vld [vmem:[#allocation5 + $0x2c] ss:$16 sps:$4 sm:$0xff]  }
  0x80   : > { %v2074_v26 = vld [vmem:[#allocation5 + $0x20] ss:$16 sps:$4 sm:$0xff]   ;;  %v2075_v27 = vld [vmem:[#allocation5 + $0x28] ss:$16 sps:$4 sm:$0xff]   ;;  %v2076_v28 = vld [vmem:[#allocation5 + $0x4] ss:$16 sps:$4 sm:$0xff]  }
  0x81   : > { %825 = vmatpush1.bf16.msra.mxu0 %v2050_v10  ;;  %866 = vmatpush1.bf16.msra.mxu1 %v2051_v11  ;;  %v2078_v29 = vld [vmem:[#allocation5 + $0xc] ss:$16 sps:$4 sm:$0xff]   ;;  %v2080_v30 = vld [vmem:[#allocation5] ss:$16 sps:$4 sm:$0xff]   ;;  %v2081_v31 = vld [vmem:[#allocation5 + $0x8] ss:$16 sps:$4 sm:$0xff]  }
  0x82   : > { %826 = vmatprep.subr.bf16.mxu0 %v2052_v12  ;;  %867 = vmatprep.subr.bf16.mxu1 %v2054_v13  ;;  %v2082_v32 = vld [vmem:[#allocation5 + $0x1e4] ss:$16 sps:$4 sm:$0xff]   ;;  %v2084_v33 = vld [vmem:[#allocation5 + $0x1ec] ss:$16 sps:$4 sm:$0xff]   ;;  %v2086_v34 = vld [vmem:[#allocation5 + $0x1e0] ss:$16 sps:$4 sm:$0xff]  }
  0x83   : > { %v2087_v35 = vld [vmem:[#allocation5 + $0x1e8] ss:$16 sps:$4 sm:$0xff]   ;;  %v2088_v36 = vld [vmem:[#allocation5 + $0x1c4] ss:$16 sps:$4 sm:$0xff]   ;;  %v2090_v37 = vld [vmem:[#allocation5 + $0x1cc] ss:$16 sps:$4 sm:$0xff]  }
  0x84   : > { %v2092_v38 = vld [vmem:[#allocation5 + $0x1c0] ss:$16 sps:$4 sm:$0xff]   ;;  %v2093_v39 = vld [vmem:[#allocation5 + $0x1c8] ss:$16 sps:$4 sm:$0xff]   ;;  %v2094_v40 = vld [vmem:[#allocation5 + $0x1a4] ss:$16 sps:$4 sm:$0xff]  }
  0x85   : > { %827 = vmatpush1.bf16.msra.mxu0 %v2056_v14  ;;  %868 = vmatpush1.bf16.msra.mxu1 %v2057_v15  ;;  %v2096_v41 = vld [vmem:[#allocation5 + $0x1ac] ss:$16 sps:$4 sm:$0xff]   ;;  %v2098_v42 = vld [vmem:[#allocation5 + $0x1a0] ss:$16 sps:$4 sm:$0xff]   ;;  %v2099_v43 = vld [vmem:[#allocation5 + $0x1a8] ss:$16 sps:$4 sm:$0xff]  }
  0x86   : > { %828 = vmatprep.subr.bf16.mxu0 %v2058_v16  ;;  %869 = vmatprep.subr.bf16.mxu1 %v2060_v17  ;;  %v2100_v44 = vld [vmem:[#allocation5 + $0x184] ss:$16 sps:$4 sm:$0xff]   ;;  %v2102_v45 = vld [vmem:[#allocation5 + $0x18c] ss:$16 sps:$4 sm:$0xff]   ;;  %v2104_v47 = vld [vmem:[#allocation5 + $0x180] ss:$16 sps:$4 sm:$0xff]  }
  0x87   : > { %v406_v46 = vld [vmem:[%s2676_s7] sm:$0xff]  ;;  %v2138_v9 = vld [vmem:[#allocation8 + $0x60] ss:$8 sps:$4 sm:$0xff]   ;;  %s1915_s24 = sshll.u32 %s2543_s15, 7  ;;  %s404_s28 = scalar_lea.vmem [#allocation11], %s1761_s25 }
  0x88   : > { %v1768_v48 = vcombine.high %v406_v46, %v406_v46  ;;  %v2105_v49 = vld [vmem:[#allocation5 + $0x188] ss:$16 sps:$4 sm:$0xff]   ;;  %v2106_v50 = vld [vmem:[#allocation5 + $0x164] ss:$16 sps:$4 sm:$0xff]   ;;  %v2108_v51 = vld [vmem:[#allocation5 + $0x16c] ss:$16 sps:$4 sm:$0xff]   ;;  %v1767_v4 = vcombine.low %v406_v46, %v406_v46  ;;  %s2721_s7 = scalar_lea.hbm %s2767_s9, %s1915_s24 }
  0x89   : > { %829 = vmatpush1.bf16.msra.mxu0 %v2062_v18  ;;  %870 = vmatpush1.bf16.msra.mxu1 %v2063_v19  ;;  %v2110_v52 = vld [vmem:[#allocation5 + $0x160] ss:$16 sps:$4 sm:$0xff]   ;;  %v2111_v53 = vld [vmem:[#allocation5 + $0x168] ss:$16 sps:$4 sm:$0xff]   ;;  %v2112_v54 = vld [vmem:[#allocation5 + $0x144] ss:$16 sps:$4 sm:$0xff]  }
  0x8a   : > { %830 = vmatprep.subr.bf16.mxu0 %v2064_v20  ;;  %871 = vmatprep.subr.bf16.mxu1 %v2066_v21  ;;  %v2114_v55 = vld [vmem:[#allocation5 + $0x14c] ss:$16 sps:$4 sm:$0xff]   ;;  %v2116_v56 = vld [vmem:[#allocation5 + $0x140] ss:$16 sps:$4 sm:$0xff]   ;;  %v2117_v57 = vld [vmem:[#allocation5 + $0x148] ss:$16 sps:$4 sm:$0xff]  }
  0x8b   : > { %852 = vmatprep.mubr.bf16.mxu0 %v1768_v48  ;;  %893 = vmatprep.mubr.bf16.mxu1 %v1768_v48  ;;  %v2118_v58 = vld [vmem:[#allocation5 + $0x124] ss:$16 sps:$4 sm:$0xff]   ;;  %v2120_v59 = vld [vmem:[#allocation5 + $0x12c] ss:$16 sps:$4 sm:$0xff]   ;;  %v2122_v60 = vld [vmem:[#allocation5 + $0x120] ss:$16 sps:$4 sm:$0xff]  }
  0x8c   : > { %v2123_v61 = vld [vmem:[#allocation5 + $0x128] ss:$16 sps:$4 sm:$0xff]   ;;  %v2124_v62 = vld [vmem:[#allocation5 + $0x104] ss:$16 sps:$4 sm:$0xff]   ;;  %v2126_v63 = vld [vmem:[#allocation5 + $0x10c] ss:$16 sps:$4 sm:$0xff]  }
  0x8d   : > { %831 = vmatpush1.bf16.msra.mxu0 %v2068_v22  ;;  %872 = vmatpush1.bf16.msra.mxu1 %v2069_v23  ;;  %v2128_v0 = vld [vmem:[#allocation5 + $0x100] ss:$16 sps:$4 sm:$0xff]   ;;  %v2129_v1 = vld [vmem:[#allocation5 + $0x108] ss:$16 sps:$4 sm:$0xff]   ;;  %v2132_v5 = vld [vmem:[#allocation8 + $0x70] ss:$8 sps:$4 sm:$0xff]  }
  0x8e   : > { %832 = vmatprep.subr.bf16.mxu0 %v2070_v24  ;;  %873 = vmatprep.subr.bf16.mxu1 %v2072_v25  ;;  %v2134_v2 = vld [vmem:[#allocation8 + $0x74] ss:$8 sps:$4 sm:$0xff]   ;;  %v2135_v6 = vld [vmem:[#allocation8 + $0x170] ss:$8 sps:$4 sm:$0xff]   ;;  %v2140_v7 = vld [vmem:[#allocation8 + $0x64] ss:$8 sps:$4 sm:$0xff]  }
  0x8f   : > { %v2137_v3 = vld [vmem:[#allocation8 + $0x174] ss:$8 sps:$4 sm:$0xff]   ;;  %v2143_v8 = vld [vmem:[#allocation8 + $0x164] ss:$8 sps:$4 sm:$0xff]   ;;  %v2141_v10 = vld [vmem:[#allocation8 + $0x160] ss:$8 sps:$4 sm:$0xff]  }
  0x90   : > { %v2146_v11 = vld [vmem:[#allocation8 + $0x54] ss:$8 sps:$4 sm:$0xff]   ;;  %v2144_v13 = vld [vmem:[#allocation8 + $0x50] ss:$8 sps:$4 sm:$0xff]   ;;  %v2152_v15 = vld [vmem:[#allocation8 + $0x44] ss:$8 sps:$4 sm:$0xff]  }
  0x91   : > { %833 = vmatpush1.bf16.msra.mxu0 %v2074_v26  ;;  %874 = vmatpush1.bf16.msra.mxu1 %v2075_v27  ;;  %v2149_v12 = vld [vmem:[#allocation8 + $0x154] ss:$8 sps:$4 sm:$0xff]   ;;  %v2147_v14 = vld [vmem:[#allocation8 + $0x150] ss:$8 sps:$4 sm:$0xff]   ;;  %v2155_v16 = vld [vmem:[#allocation8 + $0x144] ss:$8 sps:$4 sm:$0xff]  }
  0x92   : > { %834 = vmatprep.subr.bf16.mxu0 %v2076_v28  ;;  %875 = vmatprep.subr.bf16.mxu1 %v2078_v29  ;;  %v2150_v17 = vld [vmem:[#allocation8 + $0x40] ss:$8 sps:$4 sm:$0xff]   ;;  %v2158_v19 = vld [vmem:[#allocation8 + $0x34] ss:$8 sps:$4 sm:$0xff]   ;;  %v2156_v21 = vld [vmem:[#allocation8 + $0x30] ss:$8 sps:$4 sm:$0xff]  }
  0x93   : > { %v2153_v18 = vld [vmem:[#allocation8 + $0x140] ss:$8 sps:$4 sm:$0xff]   ;;  %v2161_v20 = vld [vmem:[#allocation8 + $0x134] ss:$8 sps:$4 sm:$0xff]   ;;  %v2159_v22 = vld [vmem:[#allocation8 + $0x130] ss:$8 sps:$4 sm:$0xff]  }
  0x94   : > { %v2164_v23 = vld [vmem:[#allocation8 + $0x24] ss:$8 sps:$4 sm:$0xff]   ;;  %v2162_v25 = vld [vmem:[#allocation8 + $0x20] ss:$8 sps:$4 sm:$0xff]   ;;  %v2170_v27 = vld [vmem:[#allocation8 + $0x14] ss:$8 sps:$4 sm:$0xff]  }
  0x95   : > { %835 = vmatpush1.bf16.msra.mxu0 %v2080_v30  ;;  %876 = vmatpush1.bf16.msra.mxu1 %v2081_v31  ;;  %v2167_v24 = vld [vmem:[#allocation8 + $0x124] ss:$8 sps:$4 sm:$0xff]   ;;  %v2165_v26 = vld [vmem:[#allocation8 + $0x120] ss:$8 sps:$4 sm:$0xff]   ;;  %v2173_v28 = vld [vmem:[#allocation8 + $0x114] ss:$8 sps:$4 sm:$0xff]  }
  0x96   : > { %836 = vmatprep.subr.bf16.mxu0 %v2082_v32  ;;  %877 = vmatprep.subr.bf16.mxu1 %v2084_v33  ;;  %v2168_v29 = vld [vmem:[#allocation8 + $0x10] ss:$8 sps:$4 sm:$0xff]   ;;  %v2176_v31 = vld [vmem:[#allocation8 + $0x4] ss:$8 sps:$4 sm:$0xff]   ;;  %v2174_v33 = vld [vmem:[#allocation8] ss:$8 sps:$4 sm:$0xff]  }
  0x97   : > { %v2171_v30 = vld [vmem:[#allocation8 + $0x110] ss:$8 sps:$4 sm:$0xff]   ;;  %v2179_v32 = vld [vmem:[#allocation8 + $0x104] ss:$8 sps:$4 sm:$0xff]   ;;  %s1642_s19 = sshll.u32 %s404_s28, 4  ;;  %s1629_s1 = scalar_lea.sflag [#allocation4], %s2670_s2  ;;  %s1643_s19 = int_to_ptr.vmem [resolvable:$true] %s1642_s19 }
  0x98   : > { %v2195_v46 = vld [vmem:[#allocation8 + $0x1d0] ss:$8 sps:$4 sm:$0xff]   ;;  %v2203_v48 = vld [vmem:[#allocation8 + $0x1c4] ss:$8 sps:$4 sm:$0xff]   ;;  %s2386_s16 = scalar_lea.vmem %s1643_s19, 128  ;;  %p2793_p7 = scmp.ne.s32.totalorder %s2784_s18, 0 }
  0x99   : > { %837 = vmatpush2.bf16.msra.mxu0 %v2086_v34  ;;  %878 = vmatpush2.bf16.msra.mxu1 %v2087_v35  ;;  %v2177_v34 = vld [vmem:[#allocation8 + $0x100] ss:$8 sps:$4 sm:$0xff]   ;;  %v2182_v35 = vld [vmem:[#allocation8 + $0xf4] ss:$8 sps:$4 sm:$0xff]   ;;  %p2387_p8 = scmp.ne.s32.totalorder %s1643_s19, %s2386_s16  ;;  %s2471_s15 = smov [#allocation11]  }
  0x9a   : > { %838 = vmatprep.subr.bf16.mxu0 %v2088_v36  ;;  %879 = vmatprep.subr.bf16.mxu1 %v2090_v37  ;;  %v2185_v36 = vld [vmem:[#allocation8 + $0x1f4] ss:$8 sps:$4 sm:$0xff]   ;;  %v2180_v37 = vld [vmem:[#allocation8 + $0xf0] ss:$8 sps:$4 sm:$0xff]   ;;  %s2390_s25 = sshll.u32 %s2471_s15, 4  ;;  %s2391_s25 = int_to_ptr.vmem [resolvable:$false] %s2390_s25 }
  0x9b   : > { %p2388_p10 = pnand %p2387_p8, %p2793_p7  ;;  %s2392_s20 = scalar_lea.vmem %s2391_s25, 256 }
  0x9c   : > { %p2393_p12 = scmp.lt.s32.totalorder %s1643_s19, %s2391_s25  ;;  %p2394_p5 = scmp.lt.s32.totalorder %s2392_s20, %s2386_s16 }
  0x9d   : > { %839 = vmatpush2.bf16.msra.mxu0 %v2092_v38  ;;  %880 = vmatpush2.bf16.msra.mxu1 %v2093_v39  ;;  %v2183_v38 = vld [vmem:[#allocation8 + $0x1f0] ss:$8 sps:$4 sm:$0xff]   ;;  %v2188_v39 = vld [vmem:[#allocation8 + $0xe4] ss:$8 sps:$4 sm:$0xff]   ;;  %p2389_p0 = pneg %p2388_p10 }
  0x9e   : > { %840 = vmatprep.subr.bf16.mxu0 %v2094_v40  ;;  %881 = vmatprep.subr.bf16.mxu1 %v2096_v41  ;;  %v2191_v40 = vld [vmem:[#allocation8 + $0x1e4] ss:$8 sps:$4 sm:$0xff]   ;;  %v2186_v41 = vld [vmem:[#allocation8 + $0xe0] ss:$8 sps:$4 sm:$0xff]   ;;  %p2395_p9 = por %p2394_p5, %p2393_p12 }
  0xa0   : > { %p2396_p11 = pnand %p2395_p9, %p2389_p0 }
  0xa1   : > { %841 = vmatpush2.bf16.msra.mxu0 %v2098_v42  ;;  %882 = vmatpush2.bf16.msra.mxu1 %v2099_v43  ;;  %v2189_v42 = vld [vmem:[#allocation8 + $0x1e0] ss:$8 sps:$4 sm:$0xff]   ;;  %v2194_v43 = vld [vmem:[#allocation8 + $0xd4] ss:$8 sps:$4 sm:$0xff]  }
  0xa2   : > { %842 = vmatprep.subr.bf16.mxu0 %v2100_v44  ;;  %883 = vmatprep.subr.bf16.mxu1 %v2102_v45  ;;  %v2197_v44 = vld [vmem:[#allocation8 + $0x1d4] ss:$8 sps:$4 sm:$0xff]   ;;  %v2192_v45 = vld [vmem:[#allocation8 + $0xd0] ss:$8 sps:$4 sm:$0xff]  }
  0xa5   : > { %843 = vmatpush2.bf16.msra.mxu0 %v2104_v47  ;;  %884 = vmatpush2.bf16.msra.mxu1 %v2105_v49  ;;  %v2200_v47 = vld [vmem:[#allocation8 + $0xc4] ss:$8 sps:$4 sm:$0xff]   ;;  %v2198_v49 = vld [vmem:[#allocation8 + $0xc0] ss:$8 sps:$4 sm:$0xff]  }
  0xa6   : > { %844 = vmatprep.subr.bf16.mxu0 %v2106_v50  ;;  %885 = vmatprep.subr.bf16.mxu1 %v2108_v51  ;;  %v2201_v50 = vld [vmem:[#allocation8 + $0x1c0] ss:$8 sps:$4 sm:$0xff]   ;;  %v2206_v51 = vld [vmem:[#allocation8 + $0xb4] ss:$8 sps:$4 sm:$0xff]  }
  0xa9   : > { %845 = vmatpush2.bf16.msra.mxu0 %v2110_v52  ;;  %886 = vmatpush2.bf16.msra.mxu1 %v2111_v53  ;;  %v2209_v52 = vld [vmem:[#allocation8 + $0x1b4] ss:$8 sps:$4 sm:$0xff]   ;;  %v2204_v53 = vld [vmem:[#allocation8 + $0xb0] ss:$8 sps:$4 sm:$0xff]  }
  0xaa   : > { %846 = vmatprep.subr.bf16.mxu0 %v2112_v54  ;;  %887 = vmatprep.subr.bf16.mxu1 %v2114_v55  ;;  %v2207_v54 = vld [vmem:[#allocation8 + $0x1b0] ss:$8 sps:$4 sm:$0xff]   ;;  %v2212_v55 = vld [vmem:[#allocation8 + $0xa4] ss:$8 sps:$4 sm:$0xff]  }
  0xad   : > { %847 = vmatpush2.bf16.msra.mxu0 %v2116_v56  ;;  %888 = vmatpush2.bf16.msra.mxu1 %v2117_v57  ;;  %v2215_v56 = vld [vmem:[#allocation8 + $0x1a4] ss:$8 sps:$4 sm:$0xff]   ;;  %v2210_v57 = vld [vmem:[#allocation8 + $0xa0] ss:$8 sps:$4 sm:$0xff]  }
  0xae   : > { %848 = vmatprep.subr.bf16.mxu0 %v2118_v58  ;;  %889 = vmatprep.subr.bf16.mxu1 %v2120_v59  ;;  %v2213_v58 = vld [vmem:[#allocation8 + $0x1a0] ss:$8 sps:$4 sm:$0xff]   ;;  %v2218_v59 = vld [vmem:[#allocation8 + $0x94] ss:$8 sps:$4 sm:$0xff]  }
  0xb1   : > { %849 = vmatpush2.bf16.msra.mxu0 %v2122_v60  ;;  %890 = vmatpush2.bf16.msra.mxu1 %v2123_v61  ;;  %v2221_v60 = vld [vmem:[#allocation8 + $0x194] ss:$8 sps:$4 sm:$0xff]   ;;  %v2216_v61 = vld [vmem:[#allocation8 + $0x90] ss:$8 sps:$4 sm:$0xff]  }
  0xb2   : > { %850 = vmatprep.subr.bf16.mxu0 %v2124_v62  ;;  %891 = vmatprep.subr.bf16.mxu1 %v2126_v63  ;;  %v2219_v62 = vld [vmem:[#allocation8 + $0x190] ss:$8 sps:$4 sm:$0xff]   ;;  %v2222_v63 = vld [vmem:[#allocation8 + $0x80] ss:$8 sps:$4 sm:$0xff]  }
  0xb5   : > { %851 = vmatpush2.bf16.msra.mxu0 %v2128_v0  ;;  %892 = vmatpush2.bf16.msra.mxu1 %v2129_v1  ;;  %v2224_v0 = vld [vmem:[#allocation8 + $0x84] ss:$8 sps:$4 sm:$0xff]   ;;  %v2225_v1 = vld [vmem:[#allocation8 + $0x180] ss:$8 sps:$4 sm:$0xff]  }
  0xb6   : > { %1323 = vmatprep.subr.bf16.mxu0 %v2134_v2  ;;  %1364 = vmatprep.subr.bf16.mxu1 %v2137_v3  ;;  %v2227_v2 = vld [vmem:[#allocation8 + $0x184] ss:$8 sps:$4 sm:$0xff]   ;;  %v473_v3 = vlaneseq }
  0xb8   : > { %853 = vmatmul.mubr.bf16.vlgmr.msra.gmra.mxu0 %v1767_v4  ;;  %894 = vmatmul.mubr.bf16.vlgmr.msra.gmra.mxu1 %v1767_v4  ;;  %v474_v4 = vshrl.u32 %v473_v3, 7  ;;  %v2229_v3 = vld [vmem:[#allocation10 + $0x38] sm:$0xff]  }
  0xb9   : > { %1324 = vmatpush1.bf16.msra.mxu0 %v2132_v5  ;;  %1365 = vmatpush1.bf16.msra.mxu1 %v2135_v6 }
  0xba   : > { %1325 = vmatprep.subr.bf16.mxu0 %v2140_v7  ;;  %1366 = vmatprep.subr.bf16.mxu1 %v2143_v8  ;;  %v2691_v5 = vsub.s32 0, %v474_v4  ;;  %v483_v6 = vsub.s32 2, %v474_v4  ;;  %v471_v7 = vld [vmem:[#allocation7] sm:$0xf]  ;;  %v2693_v8 = vsub.s32 1, %v474_v4 }
  0xbd   : > { %1326 = vmatpush1.bf16.msra.mxu0 %v2138_v9  ;;  %1367 = vmatpush1.bf16.msra.mxu1 %v2141_v10  ;;  %v487_v9 = vsub.s32 3, %v474_v4  ;;  %v476_v10 = vrot.slane %v471_v7, %v2691_v5  ;;  %v2230_v4 = vld [vmem:[#allocation10 + $0x70] sm:$0xff]  }
  0xbe   : > { %1327 = vmatprep.subr.bf16.mxu0 %v2146_v11  ;;  %1368 = vmatprep.subr.bf16.mxu1 %v2149_v12  ;;  %v484_v11 = vrot.slane %v471_v7, %v483_v6 }
  0xc1   : > { %1328 = vmatpush1.bf16.msra.mxu0 %v2144_v13  ;;  %1369 = vmatpush1.bf16.msra.mxu1 %v2147_v14  ;;  %v480_v14 = vrot.slane %v471_v7, %v2693_v8 }
  0xc2   : > { %1329 = vmatprep.subr.bf16.mxu0 %v2152_v15  ;;  %1370 = vmatprep.subr.bf16.mxu1 %v2155_v16  ;;  %v488_v15 = vrot.slane %v471_v7, %v487_v9 }
  0xc5   : > { %1330 = vmatpush1.bf16.msra.mxu0 %v2150_v17  ;;  %1371 = vmatpush1.bf16.msra.mxu1 %v2153_v18 }
  0xc6   : > { %1331 = vmatprep.subr.bf16.mxu0 %v2158_v19  ;;  %1372 = vmatprep.subr.bf16.mxu1 %v2161_v20 }
  0xc9   : > { %1332 = vmatpush1.bf16.msra.mxu0 %v2156_v21  ;;  %1373 = vmatpush1.bf16.msra.mxu1 %v2159_v22 }
  0xca   : > { %1333 = vmatprep.subr.bf16.mxu0 %v2164_v23  ;;  %1374 = vmatprep.subr.bf16.mxu1 %v2167_v24 }
  0xcd   : > { %1334 = vmatpush1.bf16.msra.mxu0 %v2162_v25  ;;  %1375 = vmatpush1.bf16.msra.mxu1 %v2165_v26 }
  0xce   : > { %1335 = vmatprep.subr.bf16.mxu0 %v2170_v27  ;;  %1376 = vmatprep.subr.bf16.mxu1 %v2173_v28 }
  0xd1   : > { %1336 = vmatpush1.bf16.msra.mxu0 %v2168_v29  ;;  %1377 = vmatpush1.bf16.msra.mxu1 %v2171_v30 }
  0xd2   : > { %1337 = vmatprep.subr.bf16.mxu0 %v2176_v31  ;;  %1378 = vmatprep.subr.bf16.mxu1 %v2179_v32 }
  0xd5   : > { %1338 = vmatpush1.bf16.msra.mxu0 %v2174_v33  ;;  %1379 = vmatpush1.bf16.msra.mxu1 %v2177_v34 }
  0xd6   : > { %1339 = vmatprep.subr.bf16.mxu0 %v2182_v35  ;;  %1380 = vmatprep.subr.bf16.mxu1 %v2185_v36 }
  0xd9   : > { %1340 = vmatpush2.bf16.msra.mxu0 %v2180_v37  ;;  %1381 = vmatpush2.bf16.msra.mxu1 %v2183_v38 }
  0xda   : > { %1341 = vmatprep.subr.bf16.mxu0 %v2188_v39  ;;  %1382 = vmatprep.subr.bf16.mxu1 %v2191_v40 }
  0xdd   : > { %1342 = vmatpush2.bf16.msra.mxu0 %v2186_v41  ;;  %1383 = vmatpush2.bf16.msra.mxu1 %v2189_v42 }
  0xde   : > { %1343 = vmatprep.subr.bf16.mxu0 %v2194_v43  ;;  %1384 = vmatprep.subr.bf16.mxu1 %v2197_v44 }
  0xe1   : > { %1344 = vmatpush2.bf16.msra.mxu0 %v2192_v45  ;;  %1385 = vmatpush2.bf16.msra.mxu1 %v2195_v46 }
  0xe2   : > { %1345 = vmatprep.subr.bf16.mxu0 %v2200_v47  ;;  %1386 = vmatprep.subr.bf16.mxu1 %v2203_v48 }
  0xe5   : > { %1346 = vmatpush2.bf16.msra.mxu0 %v2198_v49  ;;  %1387 = vmatpush2.bf16.msra.mxu1 %v2201_v50  ;;  %v991_v50 = vld [vmem:[%s2762_s4] sm:$0x3] }
  0xe6   : > { %1347 = vmatprep.subr.bf16.mxu0 %v2206_v51  ;;  %1388 = vmatprep.subr.bf16.mxu1 %v2209_v52  ;;  %v996_v51 = vrot.slane %v991_v50, %v2691_v5  ;;  %v1000_v52 = vrot.slane %v991_v50, %v2693_v8 }
  0xe9   : > { %1348 = vmatpush2.bf16.msra.mxu0 %v2204_v53  ;;  %1389 = vmatpush2.bf16.msra.mxu1 %v2207_v54 }
  0xea   : > { %1349 = vmatprep.subr.bf16.mxu0 %v2212_v55  ;;  %1390 = vmatprep.subr.bf16.mxu1 %v2215_v56 }
  0xed   : > { %1350 = vmatpush2.bf16.msra.mxu0 %v2210_v57  ;;  %1391 = vmatpush2.bf16.msra.mxu1 %v2213_v58 }
  0xee   : > { %1351 = vmatprep.subr.bf16.mxu0 %v2218_v59  ;;  %1392 = vmatprep.subr.bf16.mxu1 %v2221_v60 }
  0xf1   : > { %1352 = vmatpush2.bf16.msra.mxu0 %v2216_v61  ;;  %1393 = vmatpush2.bf16.msra.mxu1 %v2219_v62 }
  0xf2   : > { %1353 = vmatprep.subr.bf16.mxu0 %v2224_v0  ;;  %1394 = vmatprep.subr.bf16.mxu1 %v2227_v2  ;;  %v2228_v2 = vld [vmem:[#allocation10 + $0x78] sm:$0xff]  }
  0xf5   : > { %1354 = vmatpush2.bf16.msra.mxu0 %v2222_v63  ;;  %1395 = vmatpush2.bf16.msra.mxu1 %v2225_v1 }
  0xf6   : > { %1919 = vmatprep.subr.bf16.mxu0 %v2228_v2 }
 0x178   : > { %v854_v12 = vpop.f32.mrf.mxu0  ;;  %v895_v13 = vpop.f32.mrf.mxu1 }
 0x179   : > { %v855_v16 = vadd.f32 %v854_v12, %v476_v10  ;;  %v896_v17 = vadd.f32 %v895_v13, %v484_v11 }
 0x17a   : > { %v856_v18 = vpop.f32.mrf.mxu0  ;;  %v897_v19 = vpop.f32.mrf.mxu1 }
 0x17b   : > { %v907_v20 = vmul.f32 0.70710677, %v855_v16  ;;  %v909_v21 = vmul.f32 0.70710677, %v896_v17  ;;  %v857_v22 = vadd.f32 %v856_v18, %v480_v14  ;;  %v898_v23 = vadd.f32 %v897_v19, %v488_v15  ;;  %v2231_v14 = vld [vmem:[#allocation10 + $0x30] sm:$0xff]   ;;  %v2232_v15 = vld [vmem:[#allocation10 + $0x68] sm:$0xff]  }
 0x17c   : > { %v858_v24 = vpop.f32.mrf.mxu0  ;;  %v899_v25 = vpop.f32.mrf.mxu1  ;;  %v902_v35 = vmul.f32 0.5, %v855_v16  ;;  %v904_v37 = vmul.f32 0.5, %v896_v17  ;;  %v2233_v16 = vld [vmem:[#allocation10 + $0x28] sm:$0xff]   ;;  %v2234_v17 = vld [vmem:[#allocation10 + $0x60] sm:$0xff]   ;;  %v2236_v19 = vld [vmem:[#allocation10 + $0x58] sm:$0xff]  }
 0x17d   : > { %2244 = verf.f32 %v907_v20  ;;  %v908_v26 = vmul.f32 0.70710677, %v857_v22  ;;  %v910_v29 = vmul.f32 0.70710677, %v898_v23  ;;  %v903_v38 = vmul.f32 0.5, %v857_v22  ;;  %v2235_v18 = vld [vmem:[#allocation10 + $0x20] sm:$0xff]  }
 0x17e   : > { %2246 = verf.f32 %v909_v21  ;;  %v859_v27 = vpop.f32.mrf.mxu0  ;;  %v900_v28 = vpop.f32.mrf.mxu1  ;;  %v905_v41 = vmul.f32 0.5, %v898_v23  ;;  %v2237_v20 = vld [vmem:[#allocation10 + $0x18] sm:$0xff]   ;;  %v2238_v21 = vld [vmem:[#allocation10 + $0x50] sm:$0xff]   ;;  %v2240_v23 = vld [vmem:[#allocation10 + $0x48] sm:$0xff]  }
 0x17f   : > { %2248 = verf.f32 %v908_v26  ;;  %v2239_v22 = vld [vmem:[#allocation10 + $0x10] sm:$0xff]   ;;  %v2241_v24 = vld [vmem:[#allocation10 + $0x8] sm:$0xff]   ;;  %v2242_v25 = vld [vmem:[#allocation10 + $0x40] sm:$0xff]  }
 0x180   : > { %2250 = verf.f32 %v910_v29  ;;  %v2243_v26 = vld [vmem:[#allocation10] sm:$0xff]  }
 0x18a   : > { %v2245_v30 = vpop.eup %2244 }
 0x18b   : > { %v2247_v31 = vpop.eup %2246  ;;  %v915_v32 = vadd.f32 1.0, %v2245_v30  ;;  %v1405_v30 = vld [vmem:[%s2763_s5] sm:$0x3] }
 0x18c   : > { %v917_v33 = vadd.f32 1.0, %v2247_v31  ;;  %v2249_v34 = vpop.eup %2248  ;;  %v1406_v31 = vld [vmem:[%s2764_s6] sm:$0x3] }
 0x18d   : > { %v2251_v36 = vpop.eup %2250  ;;  %v916_v39 = vadd.f32 1.0, %v2249_v34  ;;  %v919_v40 = vmul.f32 %v915_v32, %v902_v35  ;;  %v1428_v32 = vrot.slane %v1405_v30, %v2691_v5 }
 0x18e   : > { %v918_v42 = vadd.f32 1.0, %v2251_v36  ;;  %v921_v43 = vmul.f32 %v917_v33, %v904_v37  ;;  %v1432_v33 = vrot.slane %v1405_v30, %v2693_v8  ;;  %v1441_v36 = vrot.slane %v1406_v31, %v2691_v5 }
 0x18f   : > { %v920_v44 = vmul.f32 %v916_v39, %v903_v38  ;;  %v923_v47 = vpack.c.bf16 %v919_v40, %v919_v40  ;;  %v1445_v37 = vrot.slane %v1406_v31, %v2693_v8 }
 0x190   : > { %v922_v45 = vmul.f32 %v918_v42, %v905_v41  ;;  %v925_v49 = vpack.c.bf16 %v921_v43, %v921_v43 }
 0x191   : > { %v924_v46 = vpack.c.bf16 %v920_v44, %v920_v44 }
 0x192   : > { %v926_v48 = vpack.c.bf16 %v922_v45, %v922_v45 }
 0x193   : > { %1355 = vmatprep.mubr.bf16.mxu0 %v924_v46  ;;  %v1897_v46 = vld [vmem:[%s2766_s8] ss:$0 sm:$0xff] }
 0x194   : > { %1396 = vmatprep.mubr.bf16.mxu1 %v926_v48  ;;  %1356 = vmatmul.mubr.bf16.vlgmr.msra.gmra.mxu0 %v923_v47 }
 0x195   : > { %1397 = vmatmul.mubr.bf16.vlgmr.msra.gmra.mxu1 %v925_v49  ;;  %1920 = vmatpush3.bf16.msra.mxu0 %v2229_v3 }
 0x196   : > { %1921 = vmatprep.subr.bf16.mxu0 %v2230_v4 }
 0x199   : > { %1922 = vmatpush3.bf16.msra.mxu0 %v2231_v14 }
 0x19a   : > { %1923 = vmatprep.subr.bf16.mxu0 %v2232_v15 }
 0x19d   : > { %1924 = vmatpush3.bf16.msra.mxu0 %v2233_v16 }
 0x19e   : > { %1925 = vmatprep.subr.bf16.mxu0 %v2234_v17 }
 0x1a1   : > { %1926 = vmatpush3.bf16.msra.mxu0 %v2235_v18 }
 0x1a2   : > { %1927 = vmatprep.subr.bf16.mxu0 %v2236_v19 }
 0x1a5   : > { %1928 = vmatpush3.bf16.msra.mxu0 %v2237_v20 }
 0x1a6   : > { %1929 = vmatprep.subr.bf16.mxu0 %v2238_v21 }
 0x1a9   : > { %1930 = vmatpush3.bf16.msra.mxu0 %v2239_v22 }
 0x1aa   : > { %1931 = vmatprep.subr.bf16.mxu0 %v2240_v23 }
 0x1ad   : > { %1932 = vmatpush3.bf16.msra.mxu0 %v2241_v24 }
 0x1ae   : > { %1933 = vmatprep.subr.bf16.mxu0 %v2242_v25 }
 0x1b1   : > { %1934 = vmatpush3.bf16.msra.mxu0 %v2243_v26 }
 0x254   : > { %v1357_v53 = vpop.f32.mrf.mxu0 }
 0x255   : > { %v1358_v54 = vadd.f32 %v1357_v53, %v996_v51  ;;  %v1398_v55 = vpop.f32.mrf.mxu1 }
 0x256   : > { %v1359_v56 = vpop.f32.mrf.mxu0 }
 0x257   : > { %v1360_v57 = vadd.f32 %v1359_v56, %v1000_v52  ;;  %v1400_v58 = vpop.f32.mrf.mxu1  ;;  %v1399_v60 = vadd.f32 %v1398_v55, %v1358_v54 }
 0x258   : > { %v1361_v59 = vpop.f32.mrf.mxu0 }
 0x259   : > { %v1401_v61 = vadd.f32 %v1400_v58, %v1360_v57  ;;  %v1402_v62 = vpop.f32.mrf.mxu1 }
 0x25a   : > { %v1362_v63 = vpop.f32.mrf.mxu0 }
 0x25b   : > { %v1403_v0 = vpop.f32.mrf.mxu1  ;;  %v1407_v1 = vadd.f32 %v1401_v61, %v1399_v60 }
 0x25d   : > { %1408 = vadd.xlane.f32.xlu0 %v1407_v1 }
 0x2e6   : > { %v1409_v6 = vpop.xlane.xlu0 %1408 }
 0x2e7   : > { %v1411_v7 = vmul.f32 0.00390625, %v1409_v6 }
 0x2e9   : > { %v1412_v9 = vsub.f32 %v1399_v60, %v1411_v7  ;;  %v1413_v10 = vsub.f32 %v1401_v61, %v1411_v7 }
 0x2eb   : > { %v1414_v11 = vmul.f32 %v1412_v9, %v1412_v9  ;;  %v1415_v12 = vmul.f32 %v1413_v10, %v1413_v10 }
 0x2ed   : > { %v1416_v13 = vadd.f32 %v1415_v12, %v1414_v11 }
 0x2ef   : > { %1417 = vadd.xlane.f32.xlu0 %v1416_v13 }
 0x378   : > { %v1418_v27 = vpop.xlane.xlu0 %1417 }
 0x379   : > { %v1419_v28 = vmul.f32 0.00390625, %v1418_v27 }
 0x37b   : > { %v1420_v29 = vadd.f32 1e-05, %v1419_v28 }
 0x37d   : > { %2252 = vrsqrt.f32 %v1420_v29 }
 0x38a   : > { %v2253_v34 = vpop.eup %2252 }
 0x38b   : > { %v1423_v35 = vmul.f32 %v2253_v34, %v1413_v10  ;;  %v1422_v38 = vmul.f32 %v2253_v34, %v1412_v9 }
 0x38d   : > { %v1436_v39 = vmul.f32 %v1432_v33, %v1423_v35  ;;  %v1435_v40 = vmul.f32 %v1428_v32, %v1422_v38 }
 0x38f   : > { %v1449_v41 = vadd.f32 %v1445_v37, %v1436_v39  ;;  %v1448_v42 = vadd.f32 %v1441_v36, %v1435_v40 }
 0x391   : > { %v1451_v43 = vpack.c.bf16 %v1449_v41, %v1449_v41  ;;  %v1450_v44 = vpack.c.bf16 %v1448_v42, %v1448_v42 }
 0x393   : > { %1619 = vmatprep.mubr.bf16.mxu0 %v1451_v43 }
 0x394   : > { %1620 = vmatmul.mubr.bf16.vlgmr.msra.gmra.mxu0 %v1450_v44 }
 0x454   : > { %v1935_v45 = vpop.f32.mrf.mxu0 }
 0x456   : > { %v1936_v47 = vpop.f32.mrf.mxu0 }
 0x457   : > { %v1937_v5 = vadd.f32 %v1936_v47, %v1935_v45 }
 0x458   : > { %v1938_v8 = vpop.f32.mrf.mxu0 }
 0x459   : > { %v1622_v48 = vadd.f32 %v1937_v5, %v1897_v46 }
 0x45a   : > { %v1939_v49 = vpop.f32.mrf.mxu0 }
 0x45b   : > { %1627 = vst [vmem:[%s404_s28] sm:$0xff] %v1622_v48 }
 0x45c   : > { %2399 = shalt.err (!%p2396_p11)
}
 0x45d   : > { %s2400_s27 = scalar_lea.hbm %s2721_s7, 128  ;;  %s2404_s14 = scalar_lea.hbm %s2767_s9, 256 }
 0x45e   : > { %p2401_p13 = scmp.ne.s32.totalorder %s2721_s7, %s2400_s27  ;;  %p2405_p4 = scmp.lt.s32.totalorder %s2721_s7, %s2767_s9 }
 0x45f   : > { %p2406_p6 = scmp.lt.s32.totalorder %s2404_s14, %s2400_s27 }
 0x460   : > { %p2402_p1 = pnand %p2401_p13, %p2793_p7 }
 0x461   : > { %p2407_p2 = por %p2406_p6, %p2405_p4 }
 0x462   : > { %p2403_p3 = pneg %p2402_p1 }
 0x464   : > { %p2408_p8 = pnand %p2407_p2, %p2403_p3 }
 0x466   : > { %2411 = shalt.err (!%p2408_p8)
}
 0x467   : > { %1959 = dma.vmem_to_hbm [thread:$0]  (%p2793_p7), %s1643_s19, 128, %s2721_s7, %s1629_s1  }
 0x468 PF: > { %s1654_s24 = sand.u32 1, %s2446_s30   ;;  %p2794_p10 = scmp.ne.s32.totalorder %s2785_s23, 0 }
 0x469   : > { %p2795_p0 = scmp.ge.s32.totalorder %s2458_s12, 2  ;;  %s1655_s28 = scalar_lea.sflag [#allocation4], %s1654_s24 }
 0x46b   : > { %p1979_p12 = pnand %p2795_p0, %p2794_p10 }
 0x46d   : > { %p1980_p5 = pneg %p1979_p12 }
 0x46f   : > { %2441 = dma.done.wait (%p1980_p5), %s1655_s28, 128  }
 0x470   : > { %2443 = vsyncadd (%p1980_p5), %s1655_s28, 4294967168  ;;  %p24_p9 = scmp.ge.s32.totalorder %s2607_s29, 4   ;;  %s2796_s30 = smov %s2450_s10 }
 0x471   : > { %s2797_s10 = smov %s2454_s11  ;;  %s2798_s11 = smov %s2618_s17 }
 0x472   : > { %s2799_s12 = smov %s2607_s29  ;;  %26 = sbr.rel (!%p24_p9) target bundleno = 12 (0xc), region = 117 }
 0x477   :  { %1660 = vsyncpa [#allocation3], 1 }
 0x478   :  { %1662 = vsyncpa [#allocation3 + $0x1], 1 }
 0x479   :  { %1663 = vsyncpa [#allocation6], 1 }
 0x47a   :  { %1664 = vsyncpa [#allocation9], 1 }
 0x47b   :  { %1665 = vsyncpa [#allocation4], 1 }
 0x47c   :  { %1667 = vsyncpa [#allocation4 + $0x1], 1 }

</bundles_post_ra>
